<compile_context>
chip_gen: v6e
topology: v6e:2x2x1
jax: 0.10.0
libtpu: 0.0.40
codegen_flags: <defaults>
</compile_context>

<pallas_src>
import math

import jax
import jax.numpy as jnp
from jax.experimental import pallas as pl
from jax.experimental.pallas import tpu as pltpu


def _round_up(x, m):
    return (x + m - 1) // m * m


def _cdiv(a, b):
    return (a + b - 1) // b


def _mlp_kernel(x_ref, w1_ref, b1_ref, w2_ref, b2_ref, w3_ref, b3_ref, o_ref):
    # TODO(synk): nn.Dropout is a training-time op; at inference it is the
    # identity (pltpu.prng_* could supply a training-mode mask if needed).
    # x arrives in its native float dtype; cast to bf16 here on the VPU
    # (cheaper than a separate wrapper-side cast pass over HBM).
    x = x_ref[...].astype(jnp.bfloat16)              # (TB, D)

    # Linear(D -> hidden) + ReLU; bf16 MXU matmul, f32 accumulation.
    h1 = jnp.dot(x, w1_ref[...], preferred_element_type=jnp.float32) + b1_ref[...]
    h1 = jnp.maximum(h1, 0.0)

    # Linear(hidden -> hidden) + ReLU.
    h2 = jnp.dot(h1.astype(w2_ref.dtype), w2_ref[...],
                 preferred_element_type=jnp.float32) + b2_ref[...]
    h2 = jnp.maximum(h2, 0.0)

    # Linear(hidden -> 1): VPU multiply + XLU cross-lane reduction instead of
    # an N=1 MXU matmul (avoids wasting 255/256 of the MXU output columns).
    out = jnp.sum(h2 * w3_ref[...], axis=-1, keepdims=True) + b3_ref[...]
    o_ref[...] = out.astype(o_ref.dtype)             # (TB, 1)


def _padded_block_bytes(rows, cols, dtype):
    """VMEM bytes of a (rows, cols) block including lane/sublane padding."""
    bpe = jnp.dtype(dtype).itemsize
    sub = max(1, 8 * (4 // bpe))        # 8 rows (f32) / 16 rows (bf16) per vreg
    return _round_up(max(rows, 1), sub) * _round_up(max(cols, 1), 128) * bpe


def _vmem_estimate(tb, d, hidden, x_dtype, weight_buffers):
    est = 2 * _padded_block_bytes(tb, d, x_dtype)                              # x tile (2 buffers)
    est += weight_buffers * _padded_block_bytes(d, hidden, jnp.bfloat16)       # W1
    est += weight_buffers * _padded_block_bytes(hidden, hidden, jnp.bfloat16)  # W2
    est += weight_buffers * 3 * _padded_block_bytes(1, hidden, jnp.float32)    # b1, b2, w3
    est += weight_buffers * _padded_block_bytes(1, 1, jnp.float32)             # b3
    est += 2 * _padded_block_bytes(tb, 1, jnp.float32)                         # out tile (2 buffers)
    est += 2 * _padded_block_bytes(tb, hidden, jnp.float32)                    # live h1 / h2
    return int(est * 1.25)              # headroom for Mosaic internal scratch


def _vmem_budget():
    """Per-core VMEM the kernel is allowed to use (physical minus margin)."""
    try:
        cap = int(pltpu.get_tpu_info().vmem_capacity_bytes)
    except Exception:
        cap = 64 * 1024 * 1024          # conservative fallback (v7x per-TC size)
    budget = min(cap - 12 * 1024 * 1024, int(cap * 0.8))
    return max(budget, 16 * 1024 * 1024)


def _build_call(D, hidden, TB, B_pad, vmem_limit, single_buffer_weights):
    resident_kw = {}
    if single_buffer_weights:
        # Constant index_map -> the block never changes; one buffer is enough.
        resident_kw = dict(pipeline_mode=pl.Buffered(1))
    const = lambda i: (0, 0)
    in_specs = [
        pl.BlockSpec((TB, D), lambda i: (i, 0)),                 # x, batch-tiled
        pl.BlockSpec((D, hidden), const, **resident_kw),         # W1 (resident)
        pl.BlockSpec((1, hidden), const, **resident_kw),         # b1
        pl.BlockSpec((hidden, hidden), const, **resident_kw),    # W2 (resident)
        pl.BlockSpec((1, hidden), const, **resident_kw),         # b2
        pl.BlockSpec((1, hidden), const, **resident_kw),         # w3 (row)
        pl.BlockSpec((1, 1), const, **resident_kw),              # b3
    ]
    # NOTE: last dim 1 forces masked stores, but the output is only 4*TB bytes
    # per grid step; a lane-dense (1, TB) slab only pays off for very small D.
    out_specs = pl.BlockSpec((TB, 1), lambda i: (i, 0))
    return pl.pallas_call(
        _mlp_kernel,
        out_shape=jax.ShapeDtypeStruct((B_pad, 1), jnp.float32),
        grid=(B_pad // TB,),
        in_specs=in_specs,
        out_specs=out_specs,
        compiler_params=pltpu.CompilerParams(
            dimension_semantics=("parallel",),
            vmem_limit_bytes=vmem_limit,
        ),
    )


def prepare_params(params):
    """One-time conversion to the kernel's layout/dtypes.

    Call this OUTSIDE the per-step hot path so the f32->bf16 weight casts are
    not re-issued on every forward."""
    w1, b1, w2, b2, w3, b3 = params
    hidden = w1.shape[1]
    return (jnp.asarray(w1).astype(jnp.bfloat16),
            jnp.asarray(b1, jnp.float32).reshape(1, hidden),
            jnp.asarray(w2).astype(jnp.bfloat16),
            jnp.asarray(b2, jnp.float32).reshape(1, hidden),
            jnp.asarray(w3, jnp.float32).reshape(1, hidden),
            jnp.asarray(b3, jnp.float32).reshape(1, 1))


def mlp_forward(x_nchw, prepared_params, *, block_b=512):
    """x_nchw: [B, C, H, W] float. Returns [B] (matches torch squeeze(-1))."""
    w1_bf, b1_f, w2_bf, b2_f, w3_row, b3_f = prepared_params
    B = x_nchw.shape[0]
    D = math.prod(x_nchw.shape[1:])
    hidden = w1_bf.shape[1]

    # nn.Flatten semantics (row-major flatten of C, H, W). Keep native float
    # dtype; the bf16 cast happens inside the kernel.
    x2d = x_nchw.reshape(B, D)

    budget = _vmem_budget()

    # Batch tile: multiple of 8 (f32 sublane); default 512 (multiple of 256
    # for the 2x256x256 MXUs on v6e/v7x), auto-shrunk below.
    TB = min(block_b, _round_up(B, 8))
    # Megacore (v7x): ensure >= 2 grid steps when the batch is big enough so
    # the "parallel" batch axis can actually be split across TensorCores.
    if B > 8 and _cdiv(B, TB) < 2:
        TB = max(8, _round_up(_cdiv(B, 2), 8))
    # Shrink the tile until the padding-aware VMEM footprint fits the budget.
    while TB > 8 and _vmem_estimate(TB, D, hidden, x2d.dtype, 1) > budget:
        TB = max(8, _round_up(TB // 2, 8))
    # TODO(synk): for very large D (x-tile + W1 no longer fit even at TB=8),
    # add a K(=D) grid axis with an f32 VMEM accumulator ("arbitrary" axis).

    B_pad = _round_up(B, TB)
    if B_pad != B:
        x2d = jnp.pad(x2d, ((0, B_pad - B), (0, 0)))

    args = (x2d, w1_bf, b1_f, w2_bf, b2_f, w3_row, b3_f)
    try:
        out = _build_call(D, hidden, TB, B_pad, budget, True)(*args)
    except Exception:
        # Fallback: double-buffered weights if single-buffering is rejected.
        out = _build_call(D, hidden, TB, B_pad, budget, False)(*args)

    return out[:B, 0]  # drop batch padding, squeeze(-1)


def init_params(key, in_dim, hidden_dim):
    """Deterministic PyTorch-style (uniform +/- 1/sqrt(fan_in)) init.

    Weights stored as [in_features, out_features]."""
    ks = jax.random.split(key, 6)

    def lin(kw, kb, fan_in, fan_out):
        bound = 1.0 / (fan_in ** 0.5)
        w = jax.random.uniform(kw, (fan_in, fan_out), jnp.float32, -bound, bound)
        b = jax.random.uniform(kb, (1, fan_out), jnp.float32, -bound, bound)
        return w, b

    w1, b1 = lin(ks[0], ks[1], in_dim, hidden_dim)
    w2, b2 = lin(ks[2], ks[3], hidden_dim, hidden_dim)
    w3, b3 = lin(ks[4], ks[5], hidden_dim, 1)
    return (w1, b1, w2, b2, w3, b3)


if __name__ == "__main__":
    key = jax.random.PRNGKey(0)
    kx, kp = jax.random.split(key)

    # Small shapes consistent with the module's forward: NCHW input, flattened.
    B, C, H, W = 2, 4, 16, 16
    hidden_dim = 32
    in_dim = C * H * W

    x = jax.random.normal(kx, (B, C, H, W), dtype=jnp.float32)
    params = init_params(kp, in_dim, hidden_dim)
    prepared = prepare_params(params)   # one-time weight cast / layout

    y = mlp_forward(x, prepared)
    jax.block_until_ready(y)

    # Pure-JAX reference mirroring the kernel's bf16 casts (dropout=identity).
    w1, b1, w2, b2, w3, b3 = params
    x2d = x.reshape(B, in_dim)
    xb = x2d.astype(jnp.bfloat16).astype(jnp.float32)
    w1f = w1.astype(jnp.bfloat16).astype(jnp.float32)
    w2f = w2.astype(jnp.bfloat16).astype(jnp.float32)
    h1 = jnp.maximum(xb @ w1f + b1.reshape(1, -1), 0.0)
    h1b = h1.astype(jnp.bfloat16).astype(jnp.float32)
    h2 = jnp.maximum(h1b @ w2f + b2.reshape(1, -1), 0.0)
    ref = (h2 * w3.reshape(1, -1)).sum(-1) + b3.reshape(-1)

    assert y.shape == (B,)
    assert jnp.allclose(y, ref, atol=1e-3, rtol=1e-3), (y, ref)

    print("KERNEL_OK")
</pallas_src>

<mosaic_0001>
module attributes {stable_mosaic.version = 11 : i64} {
  func.func @_mlp_kernel(%arg0: i32, %arg1: memref<8x1024xf32, #tpu.memory_space<vmem>>, %arg2: memref<1024x32xbf16, #tpu.memory_space<vmem>>, %arg3: memref<1x32xf32, #tpu.memory_space<vmem>>, %arg4: memref<32x32xbf16, #tpu.memory_space<vmem>>, %arg5: memref<1x32xf32, #tpu.memory_space<vmem>>, %arg6: memref<1x32xf32, #tpu.memory_space<vmem>>, %arg7: memref<1x1xf32, #tpu.memory_space<vmem>>, %arg8: memref<8x1xf32, #tpu.memory_space<vmem>>) attributes {dimension_semantics = [#tpu.dimension_semantics<parallel>], iteration_bounds = array<i64: 1>, scalar_prefetch = 0 : i64, scratch_operands = 0 : i64, tpu.core_type = #tpu.core_type<tc>, window_params = [{transform_indices = @transform_0, window_bounds = array<i64: 8, 1024>}, {pipeline_mode = #tpu.pipeline_mode<synchronous>, transform_indices = @transform_1, window_bounds = array<i64: 1024, 32>}, {pipeline_mode = #tpu.pipeline_mode<synchronous>, transform_indices = @transform_2, window_bounds = array<i64: 1, 32>}, {pipeline_mode = #tpu.pipeline_mode<synchronous>, transform_indices = @transform_3, window_bounds = array<i64: 32, 32>}, {pipeline_mode = #tpu.pipeline_mode<synchronous>, transform_indices = @transform_4, window_bounds = array<i64: 1, 32>}, {pipeline_mode = #tpu.pipeline_mode<synchronous>, transform_indices = @transform_5, window_bounds = array<i64: 1, 32>}, {pipeline_mode = #tpu.pipeline_mode<synchronous>, transform_indices = @transform_6, window_bounds = array<i64: 1, 1>}, {transform_indices = @transform_7, window_bounds = array<i64: 8, 1>}]} {
    %c0 = arith.constant 0 : index
    %c0_0 = arith.constant 0 : index
    %0 = vector.load %arg1[%c0, %c0_0] : memref<8x1024xf32, #tpu.memory_space<vmem>>, vector<8x1024xf32>
    %1 = arith.truncf %0 : vector<8x1024xf32> to vector<8x1024xbf16>
    %c0_1 = arith.constant 0 : index
    %c0_2 = arith.constant 0 : index
    %2 = vector.load %arg2[%c0_1, %c0_2] : memref<1024x32xbf16, #tpu.memory_space<vmem>>, vector<1024x32xbf16>
    %cst = arith.constant dense<0.000000e+00> : vector<8x32xf32>
    %3 = tpu.matmul %1, %2, %cst {dimension_numbers = #tpu.dot_dimension_numbers<[1], [0], [0], [1], [0, 0, 1, 1], [], []>} : vector<8x1024xbf16>, vector<1024x32xbf16>, vector<8x32xf32> -> vector<8x32xf32>
    %c0_3 = arith.constant 0 : index
    %c0_4 = arith.constant 0 : index
    %4 = vector.load %arg3[%c0_3, %c0_4] : memref<1x32xf32, #tpu.memory_space<vmem>>, vector<1x32xf32>
    %5 = vector.broadcast %4 : vector<1x32xf32> to vector<8x32xf32>
    %6 = arith.addf %3, %5 : vector<8x32xf32>
    %cst_5 = arith.constant 0.000000e+00 : f32
    %7 = vector.broadcast %cst_5 : f32 to vector<8x32xf32>
    %8 = arith.maximumf %6, %7 : vector<8x32xf32>
    %9 = arith.truncf %8 : vector<8x32xf32> to vector<8x32xbf16>
    %c0_6 = arith.constant 0 : index
    %c0_7 = arith.constant 0 : index
    %10 = vector.load %arg4[%c0_6, %c0_7] : memref<32x32xbf16, #tpu.memory_space<vmem>>, vector<32x32xbf16>
    %cst_8 = arith.constant dense<0.000000e+00> : vector<8x32xf32>
    %11 = tpu.matmul %9, %10, %cst_8 {dimension_numbers = #tpu.dot_dimension_numbers<[1], [0], [0], [1], [0, 0, 1, 1], [], []>} : vector<8x32xbf16>, vector<32x32xbf16>, vector<8x32xf32> -> vector<8x32xf32>
    %c0_9 = arith.constant 0 : index
    %c0_10 = arith.constant 0 : index
    %12 = vector.load %arg5[%c0_9, %c0_10] : memref<1x32xf32, #tpu.memory_space<vmem>>, vector<1x32xf32>
    %13 = vector.broadcast %12 : vector<1x32xf32> to vector<8x32xf32>
    %14 = arith.addf %11, %13 : vector<8x32xf32>
    %cst_11 = arith.constant 0.000000e+00 : f32
    %15 = vector.broadcast %cst_11 : f32 to vector<8x32xf32>
    %16 = arith.maximumf %14, %15 : vector<8x32xf32>
    %c0_12 = arith.constant 0 : index
    %c0_13 = arith.constant 0 : index
    %17 = vector.load %arg6[%c0_12, %c0_13] : memref<1x32xf32, #tpu.memory_space<vmem>>, vector<1x32xf32>
    %18 = vector.broadcast %17 : vector<1x32xf32> to vector<8x32xf32>
    %19 = arith.mulf %16, %18 : vector<8x32xf32>
    %cst_14 = arith.constant dense<0.000000e+00> : vector<8xf32>
    %20 = vector.multi_reduction <add>, %19, %cst_14 [1] : vector<8x32xf32> to vector<8xf32>
    %21 = vector.shape_cast %20 : vector<8xf32> to vector<8x1xf32>
    %c0_15 = arith.constant 0 : index
    %c0_16 = arith.constant 0 : index
    %22 = vector.load %arg7[%c0_15, %c0_16] : memref<1x1xf32, #tpu.memory_space<vmem>>, vector<1x1xf32>
    %23 = vector.broadcast %22 : vector<1x1xf32> to vector<8x1xf32>
    %24 = arith.addf %21, %23 : vector<8x1xf32>
    %c0_17 = arith.constant 0 : index
    %c0_18 = arith.constant 0 : index
    %25 = vector.load %arg8[%c0_17, %c0_18] : memref<8x1xf32, #tpu.memory_space<vmem>>, vector<8x1xf32>
    tpu.vector_store %arg8[%c0_17, %c0_18], %24 {strides = array<i32>} : memref<8x1xf32, #tpu.memory_space<vmem>>, vector<8x1xf32>,
    return
  }
  func.func @transform_0(%arg0: i32) -> (i32, i32) {
    %c0_i32 = arith.constant 0 : i32
    %c0_i32_0 = arith.constant 0 : i32
    return %arg0, %c0_i32 : i32, i32
  }
  func.func @transform_1(%arg0: i32) -> (i32, i32) {
    %c0_i32 = arith.constant 0 : i32
    %c0_i32_0 = arith.constant 0 : i32
    %c0_i32_1 = arith.constant 0 : i32
    return %c0_i32, %c0_i32_0 : i32, i32
  }
  func.func @transform_2(%arg0: i32) -> (i32, i32) {
    %c0_i32 = arith.constant 0 : i32
    %c0_i32_0 = arith.constant 0 : i32
    %c0_i32_1 = arith.constant 0 : i32
    return %c0_i32, %c0_i32_0 : i32, i32
  }
  func.func @transform_3(%arg0: i32) -> (i32, i32) {
    %c0_i32 = arith.constant 0 : i32
    %c0_i32_0 = arith.constant 0 : i32
    %c0_i32_1 = arith.constant 0 : i32
    return %c0_i32, %c0_i32_0 : i32, i32
  }
  func.func @transform_4(%arg0: i32) -> (i32, i32) {
    %c0_i32 = arith.constant 0 : i32
    %c0_i32_0 = arith.constant 0 : i32
    %c0_i32_1 = arith.constant 0 : i32
    return %c0_i32, %c0_i32_0 : i32, i32
  }
  func.func @transform_5(%arg0: i32) -> (i32, i32) {
    %c0_i32 = arith.constant 0 : i32
    %c0_i32_0 = arith.constant 0 : i32
    %c0_i32_1 = arith.constant 0 : i32
    return %c0_i32, %c0_i32_0 : i32, i32
  }
  func.func @transform_6(%arg0: i32) -> (i32, i32) {
    %c0_i32 = arith.constant 0 : i32
    %c0_i32_0 = arith.constant 0 : i32
    %c0_i32_1 = arith.constant 0 : i32
    return %c0_i32, %c0_i32_0 : i32, i32
  }
  func.func @transform_7(%arg0: i32) -> (i32, i32) {
    %c0_i32 = arith.constant 0 : i32
    %c0_i32_0 = arith.constant 0 : i32
    return %arg0, %c0_i32 : i32, i32
  }
}

module attributes {stable_mosaic.version = 11 : i64} {
  func.func @_mlp_kernel(%arg0: i32, %arg1: memref<8x1024xf32, #tpu.memory_space<vmem>>, %arg2: memref<1024x32xbf16, #tpu.memory_space<vmem>>, %arg3: memref<1x32xf32, #tpu.memory_space<vmem>>, %arg4: memref<32x32xbf16, #tpu.memory_space<vmem>>, %arg5: memref<1x32xf32, #tpu.memory_space<vmem>>, %arg6: memref<1x32xf32, #tpu.memory_space<vmem>>, %arg7: memref<1x1xf32, #tpu.memory_space<vmem>>, %arg8: memref<8x1xf32, #tpu.memory_space<vmem>>) attributes {dimension_semantics = [#tpu.dimension_semantics<parallel>], iteration_bounds = array<i64: 1>, scalar_prefetch = 0 : i64, scratch_operands = 0 : i64, tpu.core_type = #tpu.core_type<tc>, window_params = [{transform_indices = @transform_0, window_bounds = array<i64: 8, 1024>}, {pipeline_mode = #tpu.pipeline_mode<synchronous>, transform_indices = @transform_1, window_bounds = array<i64: 1024, 32>}, {pipeline_mode = #tpu.pipeline_mode<synchronous>, transform_indices = @transform_2, window_bounds = array<i64: 1, 32>}, {pipeline_mode = #tpu.pipeline_mode<synchronous>, transform_indices = @transform_3, window_bounds = array<i64: 32, 32>}, {pipeline_mode = #tpu.pipeline_mode<synchronous>, transform_indices = @transform_4, window_bounds = array<i64: 1, 32>}, {pipeline_mode = #tpu.pipeline_mode<synchronous>, transform_indices = @transform_5, window_bounds = array<i64: 1, 32>}, {pipeline_mode = #tpu.pipeline_mode<synchronous>, transform_indices = @transform_6, window_bounds = array<i64: 1, 1>}, {transform_indices = @transform_7, window_bounds = array<i64: 8, 1>}]} {
    %c0 = arith.constant 0 : index
    %c0_0 = arith.constant 0 : index
    %0 = vector.load %arg1[%c0, %c0_0] : memref<8x1024xf32, #tpu.memory_space<vmem>>, vector<8x1024xf32>
    %1 = arith.truncf %0 : vector<8x1024xf32> to vector<8x1024xbf16>
    %c0_1 = arith.constant 0 : index
    %c0_2 = arith.constant 0 : index
    %2 = vector.load %arg2[%c0_1, %c0_2] : memref<1024x32xbf16, #tpu.memory_space<vmem>>, vector<1024x32xbf16>
    %cst = arith.constant dense<0.000000e+00> : vector<8x32xf32>
    %3 = tpu.matmul %1, %2, %cst {dimension_numbers = #tpu.dot_dimension_numbers<[1], [0], [0], [1], [0, 0, 1, 1], [], []>} : vector<8x1024xbf16>, vector<1024x32xbf16>, vector<8x32xf32> -> vector<8x32xf32>
    %c0_3 = arith.constant 0 : index
    %c0_4 = arith.constant 0 : index
    %4 = vector.load %arg3[%c0_3, %c0_4] : memref<1x32xf32, #tpu.memory_space<vmem>>, vector<1x32xf32>
    %5 = vector.broadcast %4 : vector<1x32xf32> to vector<8x32xf32>
    %6 = arith.addf %3, %5 : vector<8x32xf32>
    %cst_5 = arith.constant 0.000000e+00 : f32
    %7 = vector.broadcast %cst_5 : f32 to vector<8x32xf32>
    %8 = arith.maximumf %6, %7 : vector<8x32xf32>
    %9 = arith.truncf %8 : vector<8x32xf32> to vector<8x32xbf16>
    %c0_6 = arith.constant 0 : index
    %c0_7 = arith.constant 0 : index
    %10 = vector.load %arg4[%c0_6, %c0_7] : memref<32x32xbf16, #tpu.memory_space<vmem>>, vector<32x32xbf16>
    %cst_8 = arith.constant dense<0.000000e+00> : vector<8x32xf32>
    %11 = tpu.matmul %9, %10, %cst_8 {dimension_numbers = #tpu.dot_dimension_numbers<[1], [0], [0], [1], [0, 0, 1, 1], [], []>} : vector<8x32xbf16>, vector<32x32xbf16>, vector<8x32xf32> -> vector<8x32xf32>
    %c0_9 = arith.constant 0 : index
    %c0_10 = arith.constant 0 : index
    %12 = vector.load %arg5[%c0_9, %c0_10] : memref<1x32xf32, #tpu.memory_space<vmem>>, vector<1x32xf32>
    %13 = vector.broadcast %12 : vector<1x32xf32> to vector<8x32xf32>
    %14 = arith.addf %11, %13 : vector<8x32xf32>
    %cst_11 = arith.constant 0.000000e+00 : f32
    %15 = vector.broadcast %cst_11 : f32 to vector<8x32xf32>
    %16 = arith.maximumf %14, %15 : vector<8x32xf32>
    %c0_12 = arith.constant 0 : index
    %c0_13 = arith.constant 0 : index
    %17 = vector.load %arg6[%c0_12, %c0_13] : memref<1x32xf32, #tpu.memory_space<vmem>>, vector<1x32xf32>
    %18 = vector.broadcast %17 : vector<1x32xf32> to vector<8x32xf32>
    %19 = arith.mulf %16, %18 : vector<8x32xf32>
    %cst_14 = arith.constant dense<0.000000e+00> : vector<8xf32>
    %20 = vector.multi_reduction <add>, %19, %cst_14 [1] : vector<8x32xf32> to vector<8xf32>
    %21 = vector.shape_cast %20 : vector<8xf32> to vector<8x1xf32>
    %c0_15 = arith.constant 0 : index
    %c0_16 = arith.constant 0 : index
    %22 = vector.load %arg7[%c0_15, %c0_16] : memref<1x1xf32, #tpu.memory_space<vmem>>, vector<1x1xf32>
    %23 = vector.broadcast %22 : vector<1x1xf32> to vector<8x1xf32>
    %24 = arith.addf %21, %23 : vector<8x1xf32>
    %c0_17 = arith.constant 0 : index
    %c0_18 = arith.constant 0 : index
    %25 = vector.load %arg8[%c0_17, %c0_18] : memref<8x1xf32, #tpu.memory_space<vmem>>, vector<8x1xf32>
    tpu.vector_store %arg8[%c0_17, %c0_18], %24 {strides = array<i32>} : memref<8x1xf32, #tpu.memory_space<vmem>>, vector<8x1xf32>,
    return
  }
  func.func @transform_0(%arg0: i32) -> (i32, i32) {
    %c0_i32 = arith.constant 0 : i32
    %c0_i32_0 = arith.constant 0 : i32
    return %arg0, %c0_i32 : i32, i32
  }
  func.func @transform_1(%arg0: i32) -> (i32, i32) {
    %c0_i32 = arith.constant 0 : i32
    %c0_i32_0 = arith.constant 0 : i32
    %c0_i32_1 = arith.constant 0 : i32
    return %c0_i32, %c0_i32_0 : i32, i32
  }
  func.func @transform_2(%arg0: i32) -> (i32, i32) {
    %c0_i32 = arith.constant 0 : i32
    %c0_i32_0 = arith.constant 0 : i32
    %c0_i32_1 = arith.constant 0 : i32
    return %c0_i32, %c0_i32_0 : i32, i32
  }
  func.func @transform_3(%arg0: i32) -> (i32, i32) {
    %c0_i32 = arith.constant 0 : i32
    %c0_i32_0 = arith.constant 0 : i32
    %c0_i32_1 = arith.constant 0 : i32
    return %c0_i32, %c0_i32_0 : i32, i32
  }
  func.func @transform_4(%arg0: i32) -> (i32, i32) {
    %c0_i32 = arith.constant 0 : i32
    %c0_i32_0 = arith.constant 0 : i32
    %c0_i32_1 = arith.constant 0 : i32
    return %c0_i32, %c0_i32_0 : i32, i32
  }
  func.func @transform_5(%arg0: i32) -> (i32, i32) {
    %c0_i32 = arith.constant 0 : i32
    %c0_i32_0 = arith.constant 0 : i32
    %c0_i32_1 = arith.constant 0 : i32
    return %c0_i32, %c0_i32_0 : i32, i32
  }
  func.func @transform_6(%arg0: i32) -> (i32, i32) {
    %c0_i32 = arith.constant 0 : i32
    %c0_i32_0 = arith.constant 0 : i32
    %c0_i32_1 = arith.constant 0 : i32
    return %c0_i32, %c0_i32_0 : i32, i32
  }
  func.func @transform_7(%arg0: i32) -> (i32, i32) {
    %c0_i32 = arith.constant 0 : i32
    %c0_i32_0 = arith.constant 0 : i32
    return %arg0, %c0_i32 : i32, i32
  }
}

</mosaic_0001>

<bundles_post_ra>
// kernel: tpu_custom_call.1
= control target key start
LH: loop header
LB: loop body
LE: loop exit
PB: predicated region body
PF: predicated region fallthrough
CT: control target
= control target key end

     0   :  { %vm1058_vm0 = vmmov 0   ;;  %vm749_vm1 = vcmask 261120   ;;  %vm813_vm2 = vcmask 7168   ;;  %s1338_s1 = inlined_call_operand.vmem [shape: bf16[1024,32], index: 1, kind: input, shape index: {}]   ;;  %s1339_s0 = inlined_call_operand.vmem [shape: f32[8,1024], index: 0, kind: input, shape index: {}]   ;;  %s1340_s3 = inlined_call_operand.vmem [shape: bf16[32,32], index: 3, kind: input, shape index: {}]   ;;  %s1341_s2 = inlined_call_operand.vmem [shape: f32[1,32], index: 2, kind: input, shape index: {}]   ;;  %s1342_s6 = inlined_call_operand.<no memory space> [shape: f32[1,1], index: 6, kind: input, shape index: {}]   ;;  %s1343_s4 = inlined_call_operand.vmem [shape: f32[1,32], index: 4, kind: input, shape index: {}]   ;;  %s1344_s5 = inlined_call_operand.vmem [shape: f32[1,32], index: 5, kind: input, shape index: {}]   ;;  %s1345_s7 = inlined_call_operand.vmem [shape: f32[8,1], index: 7, kind: output, shape index: {}]  }
   0x1   :  { %v991_v0 = vld [vmem:[%s1338_s1 + $0x78] sm:$0xff]   ;;  %v995_v4 = vld [vmem:[%s1338_s1 + $0x70] sm:$0xff]   ;;  %v999_v8 = vld [vmem:[%s1338_s1 + $0x68] sm:$0xff]  }
   0x2   :  { %v992_v1 = vld [vmem:[%s1338_s1 + $0xf8] sm:$0xff]   ;;  %890 = vmatprep.subr.bf16.mxu0 %v991_v0  ;;  %v996_v5 = vld [vmem:[%s1338_s1 + $0xf0] sm:$0xff]   ;;  %v1000_v9 = vld [vmem:[%s1338_s1 + $0xe8] sm:$0xff]  }
   0x3   :  { %v993_v2 = vld [vmem:[%s1338_s1 + $0x38] sm:$0xff]   ;;  %912 = vmatprep.subr.bf16.mxu1 %v992_v1  ;;  %v997_v6 = vld [vmem:[%s1338_s1 + $0x30] sm:$0xff]   ;;  %v1001_v10 = vld [vmem:[%s1338_s1 + $0x28] sm:$0xff]  }
   0x4   :  { %v994_v3 = vld [vmem:[%s1338_s1 + $0xb8] sm:$0xff]   ;;  %891 = vmatpush3.bf16.msra.mxu0 %v993_v2  ;;  %v998_v7 = vld [vmem:[%s1338_s1 + $0xb0] sm:$0xff]   ;;  %v1002_v11 = vld [vmem:[%s1338_s1 + $0xa8] sm:$0xff]  }
   0x5   :  { %913 = vmatpush3.bf16.msra.mxu1 %v994_v3  ;;  %892 = vmatprep.subr.bf16.mxu0 %v995_v4  ;;  %v1003_v12 = vld [vmem:[%s1338_s1 + $0x60] sm:$0xff]   ;;  %v1007_v16 = vld [vmem:[%s1338_s1 + $0x58] sm:$0xff]   ;;  %v1011_v20 = vld [vmem:[%s1338_s1 + $0x50] sm:$0xff]  }
   0x6   :  { %914 = vmatprep.subr.bf16.mxu1 %v996_v5  ;;  %v1004_v13 = vld [vmem:[%s1338_s1 + $0xe0] sm:$0xff]   ;;  %v1008_v17 = vld [vmem:[%s1338_s1 + $0xd8] sm:$0xff]   ;;  %v1012_v21 = vld [vmem:[%s1338_s1 + $0xd0] sm:$0xff]  }
   0x7   :  { %v1005_v14 = vld [vmem:[%s1338_s1 + $0x20] sm:$0xff]   ;;  %v1009_v18 = vld [vmem:[%s1338_s1 + $0x18] sm:$0xff]   ;;  %v1013_v22 = vld [vmem:[%s1338_s1 + $0x10] sm:$0xff]  }
   0x8   :  { %893 = vmatpush3.bf16.msra.mxu0 %v997_v6  ;;  %v1006_v15 = vld [vmem:[%s1338_s1 + $0xa0] sm:$0xff]   ;;  %v1010_v19 = vld [vmem:[%s1338_s1 + $0x98] sm:$0xff]   ;;  %v1014_v23 = vld [vmem:[%s1338_s1 + $0x90] sm:$0xff]  }
   0x9   :  { %915 = vmatpush3.bf16.msra.mxu1 %v998_v7  ;;  %894 = vmatprep.subr.bf16.mxu0 %v999_v8  ;;  %v1015_v24 = vld [vmem:[%s1338_s1 + $0x48] sm:$0xff]   ;;  %v1019_v28 = vld [vmem:[%s1338_s1 + $0x40] sm:$0xff]   ;;  %v32_v33 = vld [vmem:[%s1339_s0 + $0x18] sm:$0xff] }
   0xa   :  { %916 = vmatprep.subr.bf16.mxu1 %v1000_v9  ;;  %v1016_v25 = vld [vmem:[%s1338_s1 + $0xc8] sm:$0xff]   ;;  %v1020_v29 = vld [vmem:[%s1338_s1 + $0xc0] sm:$0xff]   ;;  %v40_v36 = vpack.c.bf16 %v32_v33, %v32_v33  ;;  %v31_v38 = vld [vmem:[%s1339_s0 + $0x10] sm:$0xff] }
   0xb   :  { %v1017_v26 = vld [vmem:[%s1338_s1 + $0x8] sm:$0xff]   ;;  %v1021_v30 = vld [vmem:[%s1338_s1] sm:$0xff]   ;;  %v39_v39 = vpack.c.bf16 %v31_v38, %v31_v38  ;;  %v1023_v40 = vld [vmem:[%s1338_s1 + $0x178] sm:$0xff]  }
   0xc   :  { %895 = vmatpush3.bf16.msra.mxu0 %v1001_v10  ;;  %v1018_v27 = vld [vmem:[%s1338_s1 + $0x88] sm:$0xff]   ;;  %v1022_v31 = vld [vmem:[%s1338_s1 + $0x80] sm:$0xff]   ;;  %636 = vmatprep.mubr.bf16.mxu1 %v40_v36  ;;  %v1024_v41 = vld [vmem:[%s1338_s1 + $0x1f8] sm:$0xff]  }
   0xd   :  { %917 = vmatpush3.bf16.msra.mxu1 %v1002_v11  ;;  %896 = vmatprep.subr.bf16.mxu0 %v1003_v12  ;;  %v30_v32 = vld [vmem:[%s1339_s0 + $0x8] sm:$0xff]  ;;  %v29_v34 = vld [vmem:[%s1339_s0] sm:$0xff]  ;;  %v1025_v42 = vld [vmem:[%s1338_s1 + $0x138] sm:$0xff]  }
   0xe   :  { %918 = vmatprep.subr.bf16.mxu1 %v1004_v13  ;;  %v38_v35 = vpack.c.bf16 %v30_v32, %v30_v32  ;;  %v37_v37 = vpack.c.bf16 %v29_v34, %v29_v34  ;;  %v1026_v43 = vld [vmem:[%s1338_s1 + $0x1b8] sm:$0xff]   ;;  %v1027_v44 = vld [vmem:[%s1338_s1 + $0x170] sm:$0xff]   ;;  %v1031_v48 = vld [vmem:[%s1338_s1 + $0x168] sm:$0xff]  }
   0xf   :  { %v1028_v45 = vld [vmem:[%s1338_s1 + $0x1f0] sm:$0xff]   ;;  %v1032_v49 = vld [vmem:[%s1338_s1 + $0x1e8] sm:$0xff]   ;;  %v1035_v52 = vld [vmem:[%s1338_s1 + $0x160] sm:$0xff]  }
  0x10   :  { %897 = vmatpush3.bf16.msra.mxu0 %v1005_v14  ;;  %596 = vmatprep.mubr.bf16.mxu0 %v38_v35  ;;  %v1029_v46 = vld [vmem:[%s1338_s1 + $0x130] sm:$0xff]   ;;  %v1033_v50 = vld [vmem:[%s1338_s1 + $0x128] sm:$0xff]   ;;  %v1036_v53 = vld [vmem:[%s1338_s1 + $0x1e0] sm:$0xff]  }
  0x11   :  { %919 = vmatpush3.bf16.msra.mxu1 %v1006_v15  ;;  %898 = vmatprep.subr.bf16.mxu0 %v1007_v16  ;;  %v1030_v47 = vld [vmem:[%s1338_s1 + $0x1b0] sm:$0xff]   ;;  %v1034_v51 = vld [vmem:[%s1338_s1 + $0x1a8] sm:$0xff]   ;;  %v1037_v54 = vld [vmem:[%s1338_s1 + $0x120] sm:$0xff]  }
  0x12   :  { %920 = vmatprep.subr.bf16.mxu1 %v1008_v17  ;;  %v1038_v55 = vld [vmem:[%s1338_s1 + $0x1a0] sm:$0xff]   ;;  %v1039_v56 = vld [vmem:[%s1338_s1 + $0x158] sm:$0xff]   ;;  %v1043_v60 = vld [vmem:[%s1338_s1 + $0x150] sm:$0xff]   ;;  %v1057_v17 = vmov 0.0  }
  0x13   :  { %v1040_v57 = vld [vmem:[%s1338_s1 + $0x1d8] sm:$0xff]   ;;  %v1044_v61 = vld [vmem:[%s1338_s1 + $0x1d0] sm:$0xff]   ;;  %v1047_v0 = vld [vmem:[%s1338_s1 + $0x148] sm:$0xff]  }
  0x14   :  { %899 = vmatpush3.bf16.msra.mxu0 %v1009_v18  ;;  %v1041_v58 = vld [vmem:[%s1338_s1 + $0x118] sm:$0xff]   ;;  %v1045_v62 = vld [vmem:[%s1338_s1 + $0x110] sm:$0xff]   ;;  %v1048_v1 = vld [vmem:[%s1338_s1 + $0x1c8] sm:$0xff]  }
  0x15   :  { %921 = vmatpush3.bf16.msra.mxu1 %v1010_v19  ;;  %900 = vmatprep.subr.bf16.mxu0 %v1011_v20  ;;  %v1042_v59 = vld [vmem:[%s1338_s1 + $0x198] sm:$0xff]   ;;  %v1046_v63 = vld [vmem:[%s1338_s1 + $0x190] sm:$0xff]   ;;  %v1049_v2 = vld [vmem:[%s1338_s1 + $0x108] sm:$0xff]  }
  0x16   :  { %922 = vmatprep.subr.bf16.mxu1 %v1012_v21  ;;  %v1050_v3 = vld [vmem:[%s1338_s1 + $0x188] sm:$0xff]   ;;  %v1051_v4 = vld [vmem:[%s1338_s1 + $0x140] sm:$0xff]   ;;  %v36_v9 = vld [vmem:[%s1339_s0 + $0x38] sm:$0xff] }
  0x17   :  { %v1052_v5 = vld [vmem:[%s1338_s1 + $0x1c0] sm:$0xff]   ;;  %v34_v8 = vld [vmem:[%s1339_s0 + $0x28] sm:$0xff]  ;;  %v44_v11 = vpack.c.bf16 %v36_v9, %v36_v9  ;;  %v35_v13 = vld [vmem:[%s1339_s0 + $0x30] sm:$0xff] }
  0x18   :  { %901 = vmatpush3.bf16.msra.mxu0 %v1013_v22  ;;  %v1053_v6 = vld [vmem:[%s1338_s1 + $0x100] sm:$0xff]   ;;  %v42_v10 = vpack.c.bf16 %v34_v8, %v34_v8  ;;  %v43_v15 = vpack.c.bf16 %v35_v13, %v35_v13  ;;  %v1055_v16 = vld [vmem:[%s1340_s3 + $0x8] sm:$0xff]  }
  0x19   :  { %923 = vmatpush3.bf16.msra.mxu1 %v1014_v23  ;;  %902 = vmatprep.subr.bf16.mxu0 %v1015_v24  ;;  %v1054_v7 = vld [vmem:[%s1338_s1 + $0x180] sm:$0xff]  }
  0x1a   :  { %924 = vmatprep.subr.bf16.mxu1 %v1016_v25  ;;  %v33_v12 = vld [vmem:[%s1339_s0 + $0x20] sm:$0xff] }
  0x1b   :  { %v41_v14 = vpack.c.bf16 %v33_v12, %v33_v12  ;;  %v1056_v18 = vld [vmem:[%s1340_s3] sm:$0xff]  }
  0x1c   :  { %903 = vmatpush3.bf16.msra.mxu0 %v1017_v26 }
  0x1d   :  { %925 = vmatpush3.bf16.msra.mxu1 %v1018_v27  ;;  %904 = vmatprep.subr.bf16.mxu0 %v1019_v28  ;;  %v819_v28 = vld [vmem:[%s1341_s2] ss:$0 sm:$0xff] }
  0x1e   :  { %926 = vmatprep.subr.bf16.mxu1 %v1020_v29 }
  0x20   :  { %905 = vmatpush3.bf16.msra.mxu0 %v1021_v30 }
  0x21   :  { %927 = vmatpush3.bf16.msra.mxu1 %v1022_v31  ;;  %934 = vmatprep.subr.bf16.mxu0 %v1023_v40 }
  0x22   :  { %956 = vmatprep.subr.bf16.mxu1 %v1024_v41 }
  0x23   :  { %597 = vmatmul.mubr.bf16.vlgmr.msra.gmra.mxu0 %v37_v37 }
  0x24   :  { %637 = vmatmul.mubr.bf16.vlgmr.msra.gmra.mxu1 %v39_v39  ;;  %935 = vmatpush3.bf16.msra.mxu0 %v1025_v42 }
  0x25   :  { %957 = vmatpush3.bf16.msra.mxu1 %v1026_v43  ;;  %936 = vmatprep.subr.bf16.mxu0 %v1027_v44 }
  0x26   :  { %958 = vmatprep.subr.bf16.mxu1 %v1028_v45  ;;  %676 = vmatprep.mubr.bf16.mxu0 %v42_v10 }
  0x27   :  { %716 = vmatprep.mubr.bf16.mxu1 %v44_v11 }
  0x28   :  { %937 = vmatpush3.bf16.msra.mxu0 %v1029_v46  ;;  %v12_v46 = vstv %s1342_s6 }
  0x29   :  { %959 = vmatpush3.bf16.msra.mxu1 %v1030_v47  ;;  %938 = vmatprep.subr.bf16.mxu0 %v1031_v48  ;;  %13 = vst [vmem:[#allocation2] sm:$0x1] %v12_v46  ;;  %v884_v47 = vld [vmem:[%s1343_s4] ss:$0 sm:$0xff] }
  0x2a   :  { %960 = vmatprep.subr.bf16.mxu1 %v1032_v49 }
  0x2c   :  { %939 = vmatpush3.bf16.msra.mxu0 %v1033_v50 }
  0x2d   :  { %961 = vmatpush3.bf16.msra.mxu1 %v1034_v51  ;;  %940 = vmatprep.subr.bf16.mxu0 %v1035_v52  ;;  %v888_v51 = vld [vmem:[%s1344_s5] ss:$0 sm:$0xff] }
  0x2e   :  { %962 = vmatprep.subr.bf16.mxu1 %v1036_v53 }
  0x30   :  { %941 = vmatpush3.bf16.msra.mxu0 %v1037_v54 }
  0x31   :  { %963 = vmatpush3.bf16.msra.mxu1 %v1038_v55  ;;  %942 = vmatprep.subr.bf16.mxu0 %v1039_v56 }
  0x32   :  { %964 = vmatprep.subr.bf16.mxu1 %v1040_v57  ;;  %v889_v57 = vld [vmem:[#allocation2] ss:$0 sm:$0xff] }
  0x34   :  { %943 = vmatpush3.bf16.msra.mxu0 %v1041_v58 }
  0x35   :  { %965 = vmatpush3.bf16.msra.mxu1 %v1042_v59  ;;  %944 = vmatprep.subr.bf16.mxu0 %v1043_v60 }
  0x36   :  { %966 = vmatprep.subr.bf16.mxu1 %v1044_v61 }
  0x38   :  { %945 = vmatpush3.bf16.msra.mxu0 %v1045_v62 }
  0x39   :  { %967 = vmatpush3.bf16.msra.mxu1 %v1046_v63  ;;  %946 = vmatprep.subr.bf16.mxu0 %v1047_v0 }
  0x3a   :  { %968 = vmatprep.subr.bf16.mxu1 %v1048_v1 }
  0x3c   :  { %947 = vmatpush3.bf16.msra.mxu0 %v1049_v2 }
  0x3d   :  { %969 = vmatpush3.bf16.msra.mxu1 %v1050_v3  ;;  %948 = vmatprep.subr.bf16.mxu0 %v1051_v4 }
  0x3e   :  { %970 = vmatprep.subr.bf16.mxu1 %v1052_v5 }
  0x40   :  { %949 = vmatpush3.bf16.msra.mxu0 %v1053_v6 }
  0x41   :  { %971 = vmatpush3.bf16.msra.mxu1 %v1054_v7  ;;  %981 = vmatprep.subr.bf16.mxu0 %v1057_v17 }
  0x43   :  { %677 = vmatmul.mubr.bf16.vlgmr.msra.gmra.mxu0 %v41_v14 }
  0x44   :  { %717 = vmatmul.mubr.bf16.vlgmr.msra.gmra.mxu1 %v43_v15  ;;  %982 = vmatpush3.bf16.msra.mxu0 %v1055_v16 }
  0x45   :  { %983 = vmatprep.subr.bf16.mxu0 %v1057_v17  ;;  %985 = vmatprep.mubr.msk.bf16.mxu0 %vm1058_vm0, %v1057_v17 }
  0x48   :  { %984 = vmatpush3.bf16.msra.mxu0 %v1056_v18 }
  0xe3   :  { %v906_v19 = vpop.f32.mrf.mxu0 }
  0xe4   :  { %v928_v20 = vpop.f32.mrf.mxu1 }
  0xe5   :  { %v907_v21 = vpop.f32.mrf.mxu0 }
  0xe6   :  { %v929_v22 = vpop.f32.mrf.mxu1  ;;  %v908_v27 = vadd.f32 %v907_v21, %v906_v19 }
  0xe7   :  { %v909_v23 = vpop.f32.mrf.mxu0  ;;  %v930_v30 = vadd.f32 %v929_v22, %v928_v20 }
  0xe8   :  { %v931_v24 = vpop.f32.mrf.mxu1  ;;  %v599_v29 = vadd.f32 %v908_v27, %v819_v28 }
  0xe9   :  { %v910_v25 = vpop.f32.mrf.mxu0 }
  0xea   :  { %v932_v26 = vpop.f32.mrf.mxu1  ;;  %v639_v34 = vadd.f32 %v930_v30, %v599_v29 }
 0x103   :  { %v950_v31 = vpop.f32.mrf.mxu0 }
 0x104   :  { %v972_v32 = vpop.f32.mrf.mxu1 }
 0x105   :  { %v951_v33 = vpop.f32.mrf.mxu0 }
 0x106   :  { %v952_v35 = vadd.f32 %v951_v33, %v950_v31  ;;  %v973_v36 = vpop.f32.mrf.mxu1 }
 0x107   :  { %v953_v37 = vpop.f32.mrf.mxu0  ;;  %v974_v39 = vadd.f32 %v973_v36, %v972_v32 }
 0x108   :  { %v679_v38 = vadd.f32 %v952_v35, %v639_v34  ;;  %v975_v40 = vpop.f32.mrf.mxu1 }
 0x109   :  { %v954_v41 = vpop.f32.mrf.mxu0 }
 0x10a   :  { %v719_v42 = vadd.f32 %v974_v39, %v679_v38  ;;  %v976_v43 = vpop.f32.mrf.mxu1 }
 0x10c   :  { %v724_v44 = vmax.f32 %v719_v42, 0.0 }
 0x10e   :  { %v725_v45 = vpack.c.bf16 %v724_v44, %v724_v44 }
 0x110   :  { %986 = vmatmul.mubr.msk.bf16.vlgmr.msra.gmra.mxu0 %vm749_vm1, %v725_v45 }
 0x1d0   :  { %v787_v48 = vpop.f32.mrf.mxu0 }
 0x1d1   :  { %v788_v49 = vadd.f32 %v884_v47, %v787_v48 }
 0x1d2   :  { %v987_v50 = vpop.f32.mrf.mxu0 }
 0x1d3   :  { %v793_v52 = vmax.f32 %v788_v49, 0.0 }
 0x1d4   :  { %v790_v53 = vpop.f32.mrf.mxu0 }
 0x1d5   :  { %v801_v54 = vmul.f32 %v888_v51, %v793_v52 }
 0x1d6   :  { %v988_v55 = vpop.f32.mrf.mxu0 }
 0x1d7   :  { %v802_v56 = vsel %vm749_vm1, %v801_v54, 0.0 }
 0x1d8   :  { %803 = vadd.xlane.f32.xlu0 %v802_v56 }
 0x261   :  { %v804_v58 = vpop.xlane.xlu0 %803 }
 0x262   :  { %v812_v59 = vadd.f32 %v889_v57, %v804_v58 }
 0x264   :  { %814 = vst.msk [vmem:[%s1345_s7] sm:$0xff] %vm813_vm2, %v812_v59 }

// kernel: tpu_custom_call.1
= control target key start
LH: loop header
LB: loop body
LE: loop exit
PB: predicated region body
PF: predicated region fallthrough
CT: control target
= control target key end

     0   :  { %vm1058_vm0 = vmmov 0   ;;  %vm749_vm1 = vcmask 261120   ;;  %vm813_vm2 = vcmask 7168   ;;  %s1338_s1 = inlined_call_operand.vmem [shape: bf16[1024,32], index: 1, kind: input, shape index: {}]   ;;  %s1339_s0 = inlined_call_operand.vmem [shape: f32[8,1024], index: 0, kind: input, shape index: {}]   ;;  %s1340_s3 = inlined_call_operand.vmem [shape: bf16[32,32], index: 3, kind: input, shape index: {}]   ;;  %s1341_s2 = inlined_call_operand.vmem [shape: f32[1,32], index: 2, kind: input, shape index: {}]   ;;  %s1342_s6 = inlined_call_operand.<no memory space> [shape: f32[1,1], index: 6, kind: input, shape index: {}]   ;;  %s1343_s4 = inlined_call_operand.vmem [shape: f32[1,32], index: 4, kind: input, shape index: {}]   ;;  %s1344_s5 = inlined_call_operand.vmem [shape: f32[1,32], index: 5, kind: input, shape index: {}]   ;;  %s1345_s7 = inlined_call_operand.vmem [shape: f32[8,1], index: 7, kind: output, shape index: {}]  }
   0x1   :  { %v991_v0 = vld [vmem:[%s1338_s1 + $0x78] sm:$0xff]   ;;  %v995_v4 = vld [vmem:[%s1338_s1 + $0x70] sm:$0xff]   ;;  %v999_v8 = vld [vmem:[%s1338_s1 + $0x68] sm:$0xff]  }
   0x2   :  { %v992_v1 = vld [vmem:[%s1338_s1 + $0xf8] sm:$0xff]   ;;  %890 = vmatprep.subr.bf16.mxu0 %v991_v0  ;;  %v996_v5 = vld [vmem:[%s1338_s1 + $0xf0] sm:$0xff]   ;;  %v1000_v9 = vld [vmem:[%s1338_s1 + $0xe8] sm:$0xff]  }
   0x3   :  { %v993_v2 = vld [vmem:[%s1338_s1 + $0x38] sm:$0xff]   ;;  %912 = vmatprep.subr.bf16.mxu1 %v992_v1  ;;  %v997_v6 = vld [vmem:[%s1338_s1 + $0x30] sm:$0xff]   ;;  %v1001_v10 = vld [vmem:[%s1338_s1 + $0x28] sm:$0xff]  }
   0x4   :  { %v994_v3 = vld [vmem:[%s1338_s1 + $0xb8] sm:$0xff]   ;;  %891 = vmatpush3.bf16.msra.mxu0 %v993_v2  ;;  %v998_v7 = vld [vmem:[%s1338_s1 + $0xb0] sm:$0xff]   ;;  %v1002_v11 = vld [vmem:[%s1338_s1 + $0xa8] sm:$0xff]  }
   0x5   :  { %913 = vmatpush3.bf16.msra.mxu1 %v994_v3  ;;  %892 = vmatprep.subr.bf16.mxu0 %v995_v4  ;;  %v1003_v12 = vld [vmem:[%s1338_s1 + $0x60] sm:$0xff]   ;;  %v1007_v16 = vld [vmem:[%s1338_s1 + $0x58] sm:$0xff]   ;;  %v1011_v20 = vld [vmem:[%s1338_s1 + $0x50] sm:$0xff]  }
   0x6   :  { %914 = vmatprep.subr.bf16.mxu1 %v996_v5  ;;  %v1004_v13 = vld [vmem:[%s1338_s1 + $0xe0] sm:$0xff]   ;;  %v1008_v17 = vld [vmem:[%s1338_s1 + $0xd8] sm:$0xff]   ;;  %v1012_v21 = vld [vmem:[%s1338_s1 + $0xd0] sm:$0xff]  }
   0x7   :  { %v1005_v14 = vld [vmem:[%s1338_s1 + $0x20] sm:$0xff]   ;;  %v1009_v18 = vld [vmem:[%s1338_s1 + $0x18] sm:$0xff]   ;;  %v1013_v22 = vld [vmem:[%s1338_s1 + $0x10] sm:$0xff]  }
   0x8   :  { %893 = vmatpush3.bf16.msra.mxu0 %v997_v6  ;;  %v1006_v15 = vld [vmem:[%s1338_s1 + $0xa0] sm:$0xff]   ;;  %v1010_v19 = vld [vmem:[%s1338_s1 + $0x98] sm:$0xff]   ;;  %v1014_v23 = vld [vmem:[%s1338_s1 + $0x90] sm:$0xff]  }
   0x9   :  { %915 = vmatpush3.bf16.msra.mxu1 %v998_v7  ;;  %894 = vmatprep.subr.bf16.mxu0 %v999_v8  ;;  %v1015_v24 = vld [vmem:[%s1338_s1 + $0x48] sm:$0xff]   ;;  %v1019_v28 = vld [vmem:[%s1338_s1 + $0x40] sm:$0xff]   ;;  %v32_v33 = vld [vmem:[%s1339_s0 + $0x18] sm:$0xff] }
   0xa   :  { %916 = vmatprep.subr.bf16.mxu1 %v1000_v9  ;;  %v1016_v25 = vld [vmem:[%s1338_s1 + $0xc8] sm:$0xff]   ;;  %v1020_v29 = vld [vmem:[%s1338_s1 + $0xc0] sm:$0xff]   ;;  %v40_v36 = vpack.c.bf16 %v32_v33, %v32_v33  ;;  %v31_v38 = vld [vmem:[%s1339_s0 + $0x10] sm:$0xff] }
   0xb   :  { %v1017_v26 = vld [vmem:[%s1338_s1 + $0x8] sm:$0xff]   ;;  %v1021_v30 = vld [vmem:[%s1338_s1] sm:$0xff]   ;;  %v39_v39 = vpack.c.bf16 %v31_v38, %v31_v38  ;;  %v1023_v40 = vld [vmem:[%s1338_s1 + $0x178] sm:$0xff]  }
   0xc   :  { %895 = vmatpush3.bf16.msra.mxu0 %v1001_v10  ;;  %v1018_v27 = vld [vmem:[%s1338_s1 + $0x88] sm:$0xff]   ;;  %v1022_v31 = vld [vmem:[%s1338_s1 + $0x80] sm:$0xff]   ;;  %636 = vmatprep.mubr.bf16.mxu1 %v40_v36  ;;  %v1024_v41 = vld [vmem:[%s1338_s1 + $0x1f8] sm:$0xff]  }
   0xd   :  { %917 = vmatpush3.bf16.msra.mxu1 %v1002_v11  ;;  %896 = vmatprep.subr.bf16.mxu0 %v1003_v12  ;;  %v30_v32 = vld [vmem:[%s1339_s0 + $0x8] sm:$0xff]  ;;  %v29_v34 = vld [vmem:[%s1339_s0] sm:$0xff]  ;;  %v1025_v42 = vld [vmem:[%s1338_s1 + $0x138] sm:$0xff]  }
   0xe   :  { %918 = vmatprep.subr.bf16.mxu1 %v1004_v13  ;;  %v38_v35 = vpack.c.bf16 %v30_v32, %v30_v32  ;;  %v37_v37 = vpack.c.bf16 %v29_v34, %v29_v34  ;;  %v1026_v43 = vld [vmem:[%s1338_s1 + $0x1b8] sm:$0xff]   ;;  %v1027_v44 = vld [vmem:[%s1338_s1 + $0x170] sm:$0xff]   ;;  %v1031_v48 = vld [vmem:[%s1338_s1 + $0x168] sm:$0xff]  }
   0xf   :  { %v1028_v45 = vld [vmem:[%s1338_s1 + $0x1f0] sm:$0xff]   ;;  %v1032_v49 = vld [vmem:[%s1338_s1 + $0x1e8] sm:$0xff]   ;;  %v1035_v52 = vld [vmem:[%s1338_s1 + $0x160] sm:$0xff]  }
  0x10   :  { %897 = vmatpush3.bf16.msra.mxu0 %v1005_v14  ;;  %596 = vmatprep.mubr.bf16.mxu0 %v38_v35  ;;  %v1029_v46 = vld [vmem:[%s1338_s1 + $0x130] sm:$0xff]   ;;  %v1033_v50 = vld [vmem:[%s1338_s1 + $0x128] sm:$0xff]   ;;  %v1036_v53 = vld [vmem:[%s1338_s1 + $0x1e0] sm:$0xff]  }
  0x11   :  { %919 = vmatpush3.bf16.msra.mxu1 %v1006_v15  ;;  %898 = vmatprep.subr.bf16.mxu0 %v1007_v16  ;;  %v1030_v47 = vld [vmem:[%s1338_s1 + $0x1b0] sm:$0xff]   ;;  %v1034_v51 = vld [vmem:[%s1338_s1 + $0x1a8] sm:$0xff]   ;;  %v1037_v54 = vld [vmem:[%s1338_s1 + $0x120] sm:$0xff]  }
  0x12   :  { %920 = vmatprep.subr.bf16.mxu1 %v1008_v17  ;;  %v1038_v55 = vld [vmem:[%s1338_s1 + $0x1a0] sm:$0xff]   ;;  %v1039_v56 = vld [vmem:[%s1338_s1 + $0x158] sm:$0xff]   ;;  %v1043_v60 = vld [vmem:[%s1338_s1 + $0x150] sm:$0xff]   ;;  %v1057_v17 = vmov 0.0  }
  0x13   :  { %v1040_v57 = vld [vmem:[%s1338_s1 + $0x1d8] sm:$0xff]   ;;  %v1044_v61 = vld [vmem:[%s1338_s1 + $0x1d0] sm:$0xff]   ;;  %v1047_v0 = vld [vmem:[%s1338_s1 + $0x148] sm:$0xff]  }
  0x14   :  { %899 = vmatpush3.bf16.msra.mxu0 %v1009_v18  ;;  %v1041_v58 = vld [vmem:[%s1338_s1 + $0x118] sm:$0xff]   ;;  %v1045_v62 = vld [vmem:[%s1338_s1 + $0x110] sm:$0xff]   ;;  %v1048_v1 = vld [vmem:[%s1338_s1 + $0x1c8] sm:$0xff]  }
  0x15   :  { %921 = vmatpush3.bf16.msra.mxu1 %v1010_v19  ;;  %900 = vmatprep.subr.bf16.mxu0 %v1011_v20  ;;  %v1042_v59 = vld [vmem:[%s1338_s1 + $0x198] sm:$0xff]   ;;  %v1046_v63 = vld [vmem:[%s1338_s1 + $0x190] sm:$0xff]   ;;  %v1049_v2 = vld [vmem:[%s1338_s1 + $0x108] sm:$0xff]  }
  0x16   :  { %922 = vmatprep.subr.bf16.mxu1 %v1012_v21  ;;  %v1050_v3 = vld [vmem:[%s1338_s1 + $0x188] sm:$0xff]   ;;  %v1051_v4 = vld [vmem:[%s1338_s1 + $0x140] sm:$0xff]   ;;  %v36_v9 = vld [vmem:[%s1339_s0 + $0x38] sm:$0xff] }
  0x17   :  { %v1052_v5 = vld [vmem:[%s1338_s1 + $0x1c0] sm:$0xff]   ;;  %v34_v8 = vld [vmem:[%s1339_s0 + $0x28] sm:$0xff]  ;;  %v44_v11 = vpack.c.bf16 %v36_v9, %v36_v9  ;;  %v35_v13 = vld [vmem:[%s1339_s0 + $0x30] sm:$0xff] }
  0x18   :  { %901 = vmatpush3.bf16.msra.mxu0 %v1013_v22  ;;  %v1053_v6 = vld [vmem:[%s1338_s1 + $0x100] sm:$0xff]   ;;  %v42_v10 = vpack.c.bf16 %v34_v8, %v34_v8  ;;  %v43_v15 = vpack.c.bf16 %v35_v13, %v35_v13  ;;  %v1055_v16 = vld [vmem:[%s1340_s3 + $0x8] sm:$0xff]  }
  0x19   :  { %923 = vmatpush3.bf16.msra.mxu1 %v1014_v23  ;;  %902 = vmatprep.subr.bf16.mxu0 %v1015_v24  ;;  %v1054_v7 = vld [vmem:[%s1338_s1 + $0x180] sm:$0xff]  }
  0x1a   :  { %924 = vmatprep.subr.bf16.mxu1 %v1016_v25  ;;  %v33_v12 = vld [vmem:[%s1339_s0 + $0x20] sm:$0xff] }
  0x1b   :  { %v41_v14 = vpack.c.bf16 %v33_v12, %v33_v12  ;;  %v1056_v18 = vld [vmem:[%s1340_s3] sm:$0xff]  }
  0x1c   :  { %903 = vmatpush3.bf16.msra.mxu0 %v1017_v26 }
  0x1d   :  { %925 = vmatpush3.bf16.msra.mxu1 %v1018_v27  ;;  %904 = vmatprep.subr.bf16.mxu0 %v1019_v28  ;;  %v819_v28 = vld [vmem:[%s1341_s2] ss:$0 sm:$0xff] }
  0x1e   :  { %926 = vmatprep.subr.bf16.mxu1 %v1020_v29 }
  0x20   :  { %905 = vmatpush3.bf16.msra.mxu0 %v1021_v30 }
  0x21   :  { %927 = vmatpush3.bf16.msra.mxu1 %v1022_v31  ;;  %934 = vmatprep.subr.bf16.mxu0 %v1023_v40 }
  0x22   :  { %956 = vmatprep.subr.bf16.mxu1 %v1024_v41 }
  0x23   :  { %597 = vmatmul.mubr.bf16.vlgmr.msra.gmra.mxu0 %v37_v37 }
  0x24   :  { %637 = vmatmul.mubr.bf16.vlgmr.msra.gmra.mxu1 %v39_v39  ;;  %935 = vmatpush3.bf16.msra.mxu0 %v1025_v42 }
  0x25   :  { %957 = vmatpush3.bf16.msra.mxu1 %v1026_v43  ;;  %936 = vmatprep.subr.bf16.mxu0 %v1027_v44 }
  0x26   :  { %958 = vmatprep.subr.bf16.mxu1 %v1028_v45  ;;  %676 = vmatprep.mubr.bf16.mxu0 %v42_v10 }
  0x27   :  { %716 = vmatprep.mubr.bf16.mxu1 %v44_v11 }
  0x28   :  { %937 = vmatpush3.bf16.msra.mxu0 %v1029_v46  ;;  %v12_v46 = vstv %s1342_s6 }
  0x29   :  { %959 = vmatpush3.bf16.msra.mxu1 %v1030_v47  ;;  %938 = vmatprep.subr.bf16.mxu0 %v1031_v48  ;;  %13 = vst [vmem:[#allocation2] sm:$0x1] %v12_v46  ;;  %v884_v47 = vld [vmem:[%s1343_s4] ss:$0 sm:$0xff] }
  0x2a   :  { %960 = vmatprep.subr.bf16.mxu1 %v1032_v49 }
  0x2c   :  { %939 = vmatpush3.bf16.msra.mxu0 %v1033_v50 }
  0x2d   :  { %961 = vmatpush3.bf16.msra.mxu1 %v1034_v51  ;;  %940 = vmatprep.subr.bf16.mxu0 %v1035_v52  ;;  %v888_v51 = vld [vmem:[%s1344_s5] ss:$0 sm:$0xff] }
  0x2e   :  { %962 = vmatprep.subr.bf16.mxu1 %v1036_v53 }
  0x30   :  { %941 = vmatpush3.bf16.msra.mxu0 %v1037_v54 }
  0x31   :  { %963 = vmatpush3.bf16.msra.mxu1 %v1038_v55  ;;  %942 = vmatprep.subr.bf16.mxu0 %v1039_v56 }
  0x32   :  { %964 = vmatprep.subr.bf16.mxu1 %v1040_v57  ;;  %v889_v57 = vld [vmem:[#allocation2] ss:$0 sm:$0xff] }
  0x34   :  { %943 = vmatpush3.bf16.msra.mxu0 %v1041_v58 }
  0x35   :  { %965 = vmatpush3.bf16.msra.mxu1 %v1042_v59  ;;  %944 = vmatprep.subr.bf16.mxu0 %v1043_v60 }
  0x36   :  { %966 = vmatprep.subr.bf16.mxu1 %v1044_v61 }
  0x38   :  { %945 = vmatpush3.bf16.msra.mxu0 %v1045_v62 }
  0x39   :  { %967 = vmatpush3.bf16.msra.mxu1 %v1046_v63  ;;  %946 = vmatprep.subr.bf16.mxu0 %v1047_v0 }
  0x3a   :  { %968 = vmatprep.subr.bf16.mxu1 %v1048_v1 }
  0x3c   :  { %947 = vmatpush3.bf16.msra.mxu0 %v1049_v2 }
  0x3d   :  { %969 = vmatpush3.bf16.msra.mxu1 %v1050_v3  ;;  %948 = vmatprep.subr.bf16.mxu0 %v1051_v4 }
  0x3e   :  { %970 = vmatprep.subr.bf16.mxu1 %v1052_v5 }
  0x40   :  { %949 = vmatpush3.bf16.msra.mxu0 %v1053_v6 }
  0x41   :  { %971 = vmatpush3.bf16.msra.mxu1 %v1054_v7  ;;  %981 = vmatprep.subr.bf16.mxu0 %v1057_v17 }
  0x43   :  { %677 = vmatmul.mubr.bf16.vlgmr.msra.gmra.mxu0 %v41_v14 }
  0x44   :  { %717 = vmatmul.mubr.bf16.vlgmr.msra.gmra.mxu1 %v43_v15  ;;  %982 = vmatpush3.bf16.msra.mxu0 %v1055_v16 }
  0x45   :  { %983 = vmatprep.subr.bf16.mxu0 %v1057_v17  ;;  %985 = vmatprep.mubr.msk.bf16.mxu0 %vm1058_vm0, %v1057_v17 }
  0x48   :  { %984 = vmatpush3.bf16.msra.mxu0 %v1056_v18 }
  0xe3   :  { %v906_v19 = vpop.f32.mrf.mxu0 }
  0xe4   :  { %v928_v20 = vpop.f32.mrf.mxu1 }
  0xe5   :  { %v907_v21 = vpop.f32.mrf.mxu0 }
  0xe6   :  { %v929_v22 = vpop.f32.mrf.mxu1  ;;  %v908_v27 = vadd.f32 %v907_v21, %v906_v19 }
  0xe7   :  { %v909_v23 = vpop.f32.mrf.mxu0  ;;  %v930_v30 = vadd.f32 %v929_v22, %v928_v20 }
  0xe8   :  { %v931_v24 = vpop.f32.mrf.mxu1  ;;  %v599_v29 = vadd.f32 %v908_v27, %v819_v28 }
  0xe9   :  { %v910_v25 = vpop.f32.mrf.mxu0 }
  0xea   :  { %v932_v26 = vpop.f32.mrf.mxu1  ;;  %v639_v34 = vadd.f32 %v930_v30, %v599_v29 }
 0x103   :  { %v950_v31 = vpop.f32.mrf.mxu0 }
 0x104   :  { %v972_v32 = vpop.f32.mrf.mxu1 }
 0x105   :  { %v951_v33 = vpop.f32.mrf.mxu0 }
 0x106   :  { %v952_v35 = vadd.f32 %v951_v33, %v950_v31  ;;  %v973_v36 = vpop.f32.mrf.mxu1 }
 0x107   :  { %v953_v37 = vpop.f32.mrf.mxu0  ;;  %v974_v39 = vadd.f32 %v973_v36, %v972_v32 }
 0x108   :  { %v679_v38 = vadd.f32 %v952_v35, %v639_v34  ;;  %v975_v40 = vpop.f32.mrf.mxu1 }
 0x109   :  { %v954_v41 = vpop.f32.mrf.mxu0 }
 0x10a   :  { %v719_v42 = vadd.f32 %v974_v39, %v679_v38  ;;  %v976_v43 = vpop.f32.mrf.mxu1 }
 0x10c   :  { %v724_v44 = vmax.f32 %v719_v42, 0.0 }
 0x10e   :  { %v725_v45 = vpack.c.bf16 %v724_v44, %v724_v44 }
 0x110   :  { %986 = vmatmul.mubr.msk.bf16.vlgmr.msra.gmra.mxu0 %vm749_vm1, %v725_v45 }
 0x1d0   :  { %v787_v48 = vpop.f32.mrf.mxu0 }
 0x1d1   :  { %v788_v49 = vadd.f32 %v884_v47, %v787_v48 }
 0x1d2   :  { %v987_v50 = vpop.f32.mrf.mxu0 }
 0x1d3   :  { %v793_v52 = vmax.f32 %v788_v49, 0.0 }
 0x1d4   :  { %v790_v53 = vpop.f32.mrf.mxu0 }
 0x1d5   :  { %v801_v54 = vmul.f32 %v888_v51, %v793_v52 }
 0x1d6   :  { %v988_v55 = vpop.f32.mrf.mxu0 }
 0x1d7   :  { %v802_v56 = vsel %vm749_vm1, %v801_v54, 0.0 }
 0x1d8   :  { %803 = vadd.xlane.f32.xlu0 %v802_v56 }
 0x261   :  { %v804_v58 = vpop.xlane.xlu0 %803 }
 0x262   :  { %v812_v59 = vadd.f32 %v889_v57, %v804_v58 }
 0x264   :  { %814 = vst.msk [vmem:[%s1345_s7] sm:$0xff] %vm813_vm2, %v812_v59 }

</bundles_post_ra>
